<compile_context>
chip_gen: v7x
topology: tpu7x:2x2x1
jax: 0.10.0
libtpu: 0.0.40
codegen_flags: <defaults>
</compile_context>

<pallas_src>
import functools

import jax
import jax.numpy as jnp
from jax import lax
from jax.experimental import pallas as pl
from jax.experimental.pallas import tpu as pltpu

BN_EPS = 1e-5


def _vmem_limit_bytes():
    """~3/4 of physical VMEM, capped at 96 MiB (v5e/v6e -> 96 MiB, v7x -> 48 MiB)."""
    try:
        cap = int(pltpu.get_tpu_info().vmem_capacity_bytes)
    except Exception:
        cap = 64 * 1024 * 1024  # conservative fallback
    return min(cap * 3 // 4, 96 * 1024 * 1024)


def _conv_stats_kernel(x1_ref, x2_ref, w_ref, y_ref, stats_ref, *,
                       KH, KW, pad, H, W):
    """Pass 1 (one batch tile of Nb images per grid step).

    x1_ref, x2_ref : (Nb, Cin, H, W)   unpadded NCHW inputs
    w_ref          : (Cout, KH*KW*Cin) conv weights, row = (kh*KW + kw)*Cin + ci
    y_ref          : (Nb, Cout, Ho*Wo) conv output (pre-BN), lane-dense
    stats_ref      : (1, Cout, 2)      per-tile [sum, sum_sq] per channel (f32)
    """
    Nb, Cin = x1_ref.shape[0], x1_ref.shape[1]
    Cout = w_ref.shape[0]
    Hp, Wp = H + 2 * pad, W + 2 * pad
    Ho, Wo = Hp - KH + 1, Wp - KW + 1
    Q = Ho * Wp                      # matmul output columns (incl. pad columns)
    Lp = Hp * Wp + (KW - 1)          # flat padded length (+ slack for last tap)
    s0 = pad * Wp + pad              # flat offset of image pixel (0, 0)
    cdt = w_ref.dtype                # matmul / slab dtype (bf16 by default)

    s_acc = jnp.zeros((Cout, 1), jnp.float32)
    ss_acc = jnp.zeros((Cout, 1), jnp.float32)

    for i in range(Nb):              # static unroll over the small batch tile
        # Residual add; single cast to the matmul dtype (1x, not 9x on the slab).
        res = (x1_ref[i] + x2_ref[i]).astype(cdt)                 # (Cin, H, W)

        # Zero padding in a flat lane-major layout. Only the border strips are
        # zeros (prefix / per-row gap / suffix); the interior is the residual.
        zrow = jnp.zeros((Cin, H, Wp - W), cdt)
        body = jnp.concatenate([res, zrow], axis=2).reshape(Cin, H * Wp)
        zpre = jnp.zeros((Cin, s0), cdt)
        zpost = jnp.zeros((Cin, Lp - s0 - H * Wp), cdt)
        padf = jnp.concatenate([zpre, body, zpost], axis=1)       # (Cin, Lp)

        # im2col: every (kh, kw) tap is a CONTIGUOUS lane slice of padf
        # (lane shift only; no tile-crossing reshape, no sublane-offset slices).
        taps = [padf[:, kh * Wp + kw: kh * Wp + kw + Q]
                for kh in range(KH) for kw in range(KW)]
        patches = jnp.concatenate(taps, axis=0)                   # (KH*KW*Cin, Q)

        # Single MXU matmul, f32 accumulation. Conv bias intentionally omitted:
        # it is exactly cancelled by the training-mode BN mean subtraction.
        yq = jnp.dot(w_ref[...], patches,
                     preferred_element_type=jnp.float32)          # (Cout, Q)

        # Compact away the pad columns -> lane-dense (Cout, Ho*Wo).
        y = jnp.concatenate(
            [yq[:, oh * Wp: oh * Wp + Wo] for oh in range(Ho)], axis=1)

        y_ref[i] = y.astype(y_ref.dtype)
        # BN partial stats from the f32 accumulator (single traversal).
        s_acc = s_acc + jnp.sum(y, axis=1, keepdims=True)
        ss_acc = ss_acc + jnp.sum(y * y, axis=1, keepdims=True)

    # Tiny (2*Cout f32) per-step store; lane-narrow but negligible.
    stats_ref[0] = jnp.concatenate([s_acc, ss_acc], axis=1)       # (Cout, 2)


def _bn_apply_kernel(y_ref, scale_ref, shift_ref, out_ref):
    """Pass 2: pure lane-dense FMA with precomputed BN scale/shift."""
    out_ref[...] = (y_ref[...].astype(jnp.float32) * scale_ref[...][None]
                    + shift_ref[...][None])


def final_conv_processor(tensor1, tensor2, weight, bias, gamma, beta, *,
                         padding=1, conv_dtype=jnp.bfloat16, images_per_step=1):
    """PyTorch-semantics forward. tensor1/tensor2 NCHW, weight (Cout,Cin,KH,KW)."""
    # Conv bias is an exact no-op for the forward output under training-mode BN.
    # NOTE: PyTorch's BatchNorm2d running_mean buffer would differ by `bias`;
    # only the returned (normalized) tensor is reproduced here.
    del bias

    N, Cin, H, W = tensor1.shape
    Cout, _, KH, KW = weight.shape
    Hp, Wp = H + 2 * padding, W + 2 * padding
    Ho, Wo = Hp - KH + 1, Wp - KW + 1
    P = Ho * Wo
    K = KH * KW * Cin

    Nb = images_per_step
    assert N % Nb == 0, "images_per_step must divide the batch size"
    G = N // Nb

    # (Cout, Cin, KH, KW) -> (Cout, KH*KW*Cin), row order (kh, kw, ci).
    w2 = jnp.transpose(weight, (0, 2, 3, 1)).reshape(Cout, K).astype(conv_dtype)
    inter_dtype = conv_dtype   # bf16 intermediate halves the inter-pass HBM traffic

    params = pltpu.CompilerParams(
        dimension_semantics=("parallel",),           # batch-tile axis
        vmem_limit_bytes=_vmem_limit_bytes())

    # ---- Pass 1: residual add + conv + per-tile BN partial stats ----
    y, stats = pl.pallas_call(
        functools.partial(_conv_stats_kernel, KH=KH, KW=KW, pad=padding, H=H, W=W),
        grid_spec=pltpu.PrefetchScalarGridSpec(
            num_scalar_prefetch=0,
            grid=(G,),
            in_specs=[
                pl.BlockSpec((Nb, Cin, H, W), lambda n: (n, 0, 0, 0)),
                pl.BlockSpec((Nb, Cin, H, W), lambda n: (n, 0, 0, 0)),
                pl.BlockSpec((Cout, K), lambda n: (0, 0)),   # resident weights
            ],
            out_specs=(
                pl.BlockSpec((Nb, Cout, P), lambda n: (n, 0, 0)),
                pl.BlockSpec((1, Cout, 2), lambda n: (n, 0, 0)),
            ),
        ),
        out_shape=(
            jax.ShapeDtypeStruct((N, Cout, P), inter_dtype),
            jax.ShapeDtypeStruct((G, Cout, 2), jnp.float32),
        ),
        compiler_params=params,
    )(tensor1, tensor2, w2)

    # ---- BN finalize hoisted out of the grid: tiny (Cout,) math, done once ----
    sums = jnp.sum(stats, axis=0)                              # (Cout, 2)
    count = float(N * P)
    mean = sums[:, 0] / count
    var = jnp.maximum(sums[:, 1] / count - mean * mean, 0.0)   # guard cancellation
    scale = (gamma.astype(jnp.float32) * lax.rsqrt(var + BN_EPS)).reshape(Cout, 1)
    shift = beta.astype(jnp.float32).reshape(Cout, 1) - mean.reshape(Cout, 1) * scale

    # ---- Pass 2: lane-dense normalize (pure FMA) ----
    out = pl.pallas_call(
        _bn_apply_kernel,
        grid_spec=pltpu.PrefetchScalarGridSpec(
            num_scalar_prefetch=0,
            grid=(G,),
            in_specs=[
                pl.BlockSpec((Nb, Cout, P), lambda n: (n, 0, 0)),
                pl.BlockSpec((Cout, 1), lambda n: (0, 0)),
                pl.BlockSpec((Cout, 1), lambda n: (0, 0)),
            ],
            out_specs=pl.BlockSpec((Nb, Cout, P), lambda n: (n, 0, 0)),
        ),
        out_shape=jax.ShapeDtypeStruct((N, Cout, P), jnp.float32),
        compiler_params=params,
    )(y, scale, shift)

    # (N, Cout, Ho*Wo) -> NCHW (metadata-only reshape).
    return out.reshape(N, Cout, Ho, Wo)


def _reference(tensor1, tensor2, weight, bias, gamma, beta, padding=1):
    """Pure-JAX reference (NCHW), mirrors PyTorch Conv2d + BatchNorm2d(training)."""
    residual = tensor1 + tensor2
    out = lax.conv_general_dilated(
        residual, weight, window_strides=(1, 1),
        padding=[(padding, padding), (padding, padding)],
        dimension_numbers=("NCHW", "OIHW", "NCHW"))
    out = out + bias.reshape(1, -1, 1, 1)
    mean = jnp.mean(out, axis=(0, 2, 3), keepdims=True)
    var = jnp.mean((out - mean) ** 2, axis=(0, 2, 3), keepdims=True)
    out = (out - mean) / jnp.sqrt(var + BN_EPS)
    return out * gamma.reshape(1, -1, 1, 1) + beta.reshape(1, -1, 1, 1)


if __name__ == "__main__":
    key = jax.random.PRNGKey(0)
    k1, k2, kw, kb, kg, ke = jax.random.split(key, 6)

    N, Cin, Cout, H, W = 2, 4, 8, 16, 16
    KH = KW = 3

    tensor1 = jax.random.normal(k1, (N, Cin, H, W), jnp.float32)
    tensor2 = jax.random.normal(k2, (N, Cin, H, W), jnp.float32)

    fan_in = Cin * KH * KW
    bound = 1.0 / jnp.sqrt(fan_in)
    weight = jax.random.uniform(kw, (Cout, Cin, KH, KW), jnp.float32, -bound, bound)
    bias = jax.random.uniform(kb, (Cout,), jnp.float32, -bound, bound)
    gamma = jax.random.uniform(kg, (Cout,), jnp.float32, 0.5, 1.5)
    beta = 0.1 * jax.random.normal(ke, (Cout,), jnp.float32)

    ref = _reference(tensor1, tensor2, weight, bias, gamma, beta)

    # Exact-semantics check: f32 conv operands + f32 intermediate (tight tol).
    out_f32 = jax.block_until_ready(final_conv_processor(
        tensor1, tensor2, weight, bias, gamma, beta, conv_dtype=jnp.float32))
    assert out_f32.shape == (N, Cout, H, W)
    assert jnp.allclose(out_f32, ref, atol=1e-4, rtol=1e-4), \
        float(jnp.max(jnp.abs(out_f32 - ref)))

    # Default fast path: bf16 MXU operands + bf16 intermediate, f32 accumulation
    # (looser tolerance only because of the intentional bf16 rounding).
    out_bf16 = jax.block_until_ready(final_conv_processor(
        tensor1, tensor2, weight, bias, gamma, beta))
    assert out_bf16.shape == (N, Cout, H, W)
    assert jnp.allclose(out_bf16, ref, atol=6e-2, rtol=6e-2), \
        float(jnp.max(jnp.abs(out_bf16 - ref)))

    print("KERNEL_OK")
</pallas_src>

<mosaic_0001>
module attributes {stable_mosaic.version = 11 : i64} {
  func.func @_conv_stats_kernel(%arg0: i32, %arg1: memref<1x4x16x16xf32, #tpu.memory_space<vmem>>, %arg2: memref<1x4x16x16xf32, #tpu.memory_space<vmem>>, %arg3: memref<8x36xf32, #tpu.memory_space<vmem>>, %arg4: memref<1x8x256xf32, #tpu.memory_space<vmem>>, %arg5: memref<1x8x2xf32, #tpu.memory_space<vmem>>) attributes {dimension_semantics = [#tpu.dimension_semantics<parallel>], iteration_bounds = array<i64: 2>, scalar_prefetch = 0 : i64, scratch_operands = 0 : i64, tpu.core_type = #tpu.core_type<tc>, window_params = [{transform_indices = @transform_0, window_bounds = array<i64: 1, 4, 16, 16>}, {transform_indices = @transform_1, window_bounds = array<i64: 1, 4, 16, 16>}, {pipeline_mode = #tpu.pipeline_mode<synchronous>, transform_indices = @transform_2, window_bounds = array<i64: 8, 36>}, {transform_indices = @transform_3, window_bounds = array<i64: 1, 8, 256>}, {transform_indices = @transform_4, window_bounds = array<i64: 1, 8, 2>}]} {
    %cst = arith.constant 0.000000e+00 : f32
    %0 = vector.broadcast %cst : f32 to vector<8x1xf32>
    %cst_0 = arith.constant 0.000000e+00 : f32
    %1 = vector.broadcast %cst_0 : f32 to vector<8x1xf32>
    %c0 = arith.constant 0 : index
    %c0_1 = arith.constant 0 : index
    %c0_2 = arith.constant 0 : index
    %c0_3 = arith.constant 0 : index
    %2 = vector.load %arg1[%c0, %c0_1, %c0_2, %c0_3] : memref<1x4x16x16xf32, #tpu.memory_space<vmem>>, vector<1x4x16x16xf32>
    %3 = vector.shape_cast %2 : vector<1x4x16x16xf32> to vector<4x16x16xf32>
    %c0_4 = arith.constant 0 : index
    %c0_5 = arith.constant 0 : index
    %c0_6 = arith.constant 0 : index
    %c0_7 = arith.constant 0 : index
    %4 = vector.load %arg2[%c0_4, %c0_5, %c0_6, %c0_7] : memref<1x4x16x16xf32, #tpu.memory_space<vmem>>, vector<1x4x16x16xf32>
    %5 = vector.shape_cast %4 : vector<1x4x16x16xf32> to vector<4x16x16xf32>
    %6 = arith.addf %3, %5 : vector<4x16x16xf32>
    %cst_8 = arith.constant 0.000000e+00 : f32
    %7 = vector.broadcast %cst_8 : f32 to vector<4x16x2xf32>
    %8 = tpu.concatenate %6, %7 in 2 : vector<4x16x16xf32>, vector<4x16x2xf32> -> vector<4x16x18xf32>
    %9 = vector.shape_cast %8 : vector<4x16x18xf32> to vector<4x288xf32>
    %cst_9 = arith.constant 0.000000e+00 : f32
    %10 = vector.broadcast %cst_9 : f32 to vector<4x19xf32>
    %cst_10 = arith.constant 0.000000e+00 : f32
    %11 = vector.broadcast %cst_10 : f32 to vector<4x19xf32>
    %12 = tpu.concatenate %10, %9, %11 in 1 : vector<4x19xf32>, vector<4x288xf32>, vector<4x19xf32> -> vector<4x326xf32>
    %13 = vector.extract_strided_slice %12 {offsets = [0, 0], sizes = [4, 288], strides = [1, 1]} : vector<4x326xf32> to vector<4x288xf32>
    %14 = vector.extract_strided_slice %12 {offsets = [0, 1], sizes = [4, 288], strides = [1, 1]} : vector<4x326xf32> to vector<4x288xf32>
    %15 = vector.extract_strided_slice %12 {offsets = [0, 2], sizes = [4, 288], strides = [1, 1]} : vector<4x326xf32> to vector<4x288xf32>
    %16 = vector.extract_strided_slice %12 {offsets = [0, 18], sizes = [4, 288], strides = [1, 1]} : vector<4x326xf32> to vector<4x288xf32>
    %17 = vector.extract_strided_slice %12 {offsets = [0, 19], sizes = [4, 288], strides = [1, 1]} : vector<4x326xf32> to vector<4x288xf32>
    %18 = vector.extract_strided_slice %12 {offsets = [0, 20], sizes = [4, 288], strides = [1, 1]} : vector<4x326xf32> to vector<4x288xf32>
    %19 = vector.extract_strided_slice %12 {offsets = [0, 36], sizes = [4, 288], strides = [1, 1]} : vector<4x326xf32> to vector<4x288xf32>
    %20 = vector.extract_strided_slice %12 {offsets = [0, 37], sizes = [4, 288], strides = [1, 1]} : vector<4x326xf32> to vector<4x288xf32>
    %21 = vector.extract_strided_slice %12 {offsets = [0, 38], sizes = [4, 288], strides = [1, 1]} : vector<4x326xf32> to vector<4x288xf32>
    %22 = tpu.concatenate %13, %14, %15, %16, %17, %18, %19, %20, %21 in 0 : vector<4x288xf32>, vector<4x288xf32>, vector<4x288xf32>, vector<4x288xf32>, vector<4x288xf32>, vector<4x288xf32>, vector<4x288xf32>, vector<4x288xf32>, vector<4x288xf32> -> vector<36x288xf32>
    %c0_11 = arith.constant 0 : index
    %c0_12 = arith.constant 0 : index
    %23 = vector.load %arg3[%c0_11, %c0_12] : memref<8x36xf32, #tpu.memory_space<vmem>>, vector<8x36xf32>
    %cst_13 = arith.constant dense<0.000000e+00> : vector<8x288xf32>
    %24 = tpu.matmul %23, %22, %cst_13 {dimension_numbers = #tpu.dot_dimension_numbers<[1], [0], [0], [1], [0, 0, 1, 1], [], []>} : vector<8x36xf32>, vector<36x288xf32>, vector<8x288xf32> -> vector<8x288xf32>
    %25 = vector.extract_strided_slice %24 {offsets = [0, 0], sizes = [8, 16], strides = [1, 1]} : vector<8x288xf32> to vector<8x16xf32>
    %26 = vector.extract_strided_slice %24 {offsets = [0, 18], sizes = [8, 16], strides = [1, 1]} : vector<8x288xf32> to vector<8x16xf32>
    %27 = vector.extract_strided_slice %24 {offsets = [0, 36], sizes = [8, 16], strides = [1, 1]} : vector<8x288xf32> to vector<8x16xf32>
    %28 = vector.extract_strided_slice %24 {offsets = [0, 54], sizes = [8, 16], strides = [1, 1]} : vector<8x288xf32> to vector<8x16xf32>
    %29 = vector.extract_strided_slice %24 {offsets = [0, 72], sizes = [8, 16], strides = [1, 1]} : vector<8x288xf32> to vector<8x16xf32>
    %30 = vector.extract_strided_slice %24 {offsets = [0, 90], sizes = [8, 16], strides = [1, 1]} : vector<8x288xf32> to vector<8x16xf32>
    %31 = vector.extract_strided_slice %24 {offsets = [0, 108], sizes = [8, 16], strides = [1, 1]} : vector<8x288xf32> to vector<8x16xf32>
    %32 = vector.extract_strided_slice %24 {offsets = [0, 126], sizes = [8, 16], strides = [1, 1]} : vector<8x288xf32> to vector<8x16xf32>
    %33 = vector.extract_strided_slice %24 {offsets = [0, 144], sizes = [8, 16], strides = [1, 1]} : vector<8x288xf32> to vector<8x16xf32>
    %34 = vector.extract_strided_slice %24 {offsets = [0, 162], sizes = [8, 16], strides = [1, 1]} : vector<8x288xf32> to vector<8x16xf32>
    %35 = vector.extract_strided_slice %24 {offsets = [0, 180], sizes = [8, 16], strides = [1, 1]} : vector<8x288xf32> to vector<8x16xf32>
    %36 = vector.extract_strided_slice %24 {offsets = [0, 198], sizes = [8, 16], strides = [1, 1]} : vector<8x288xf32> to vector<8x16xf32>
    %37 = vector.extract_strided_slice %24 {offsets = [0, 216], sizes = [8, 16], strides = [1, 1]} : vector<8x288xf32> to vector<8x16xf32>
    %38 = vector.extract_strided_slice %24 {offsets = [0, 234], sizes = [8, 16], strides = [1, 1]} : vector<8x288xf32> to vector<8x16xf32>
    %39 = vector.extract_strided_slice %24 {offsets = [0, 252], sizes = [8, 16], strides = [1, 1]} : vector<8x288xf32> to vector<8x16xf32>
    %40 = vector.extract_strided_slice %24 {offsets = [0, 270], sizes = [8, 16], strides = [1, 1]} : vector<8x288xf32> to vector<8x16xf32>
    %41 = tpu.concatenate %25, %26, %27, %28, %29, %30, %31, %32, %33, %34, %35, %36, %37, %38, %39, %40 in 1 : vector<8x16xf32>, vector<8x16xf32>, vector<8x16xf32>, vector<8x16xf32>, vector<8x16xf32>, vector<8x16xf32>, vector<8x16xf32>, vector<8x16xf32>, vector<8x16xf32>, vector<8x16xf32>, vector<8x16xf32>, vector<8x16xf32>, vector<8x16xf32>, vector<8x16xf32>, vector<8x16xf32>, vector<8x16xf32> -> vector<8x256xf32>
    %c0_14 = arith.constant 0 : index
    %c0_15 = arith.constant 0 : index
    %c0_16 = arith.constant 0 : index
    %42 = vector.load %arg4[%c0_14, %c0_15, %c0_16] : memref<1x8x256xf32, #tpu.memory_space<vmem>>, vector<1x8x256xf32>
    %43 = vector.shape_cast %42 : vector<1x8x256xf32> to vector<8x256xf32>
    %44 = vector.shape_cast %41 : vector<8x256xf32> to vector<1x8x256xf32>
    tpu.vector_store %arg4[%c0_14, %c0_15, %c0_16], %44 {strides = array<i32>} : memref<1x8x256xf32, #tpu.memory_space<vmem>>, vector<1x8x256xf32>,
    %cst_17 = arith.constant dense<0.000000e+00> : vector<8xf32>
    %45 = vector.multi_reduction <add>, %41, %cst_17 [1] : vector<8x256xf32> to vector<8xf32>
    %46 = vector.shape_cast %45 : vector<8xf32> to vector<8x1xf32>
    %47 = arith.addf %0, %46 : vector<8x1xf32>
    %48 = arith.mulf %41, %41 : vector<8x256xf32>
    %cst_18 = arith.constant dense<0.000000e+00> : vector<8xf32>
    %49 = vector.multi_reduction <add>, %48, %cst_18 [1] : vector<8x256xf32> to vector<8xf32>
    %50 = vector.shape_cast %49 : vector<8xf32> to vector<8x1xf32>
    %51 = arith.addf %1, %50 : vector<8x1xf32>
    %52 = tpu.concatenate %47, %51 in 1 : vector<8x1xf32>, vector<8x1xf32> -> vector<8x2xf32>
    %c0_19 = arith.constant 0 : index
    %c0_20 = arith.constant 0 : index
    %c0_21 = arith.constant 0 : index
    %53 = vector.load %arg5[%c0_19, %c0_20, %c0_21] : memref<1x8x2xf32, #tpu.memory_space<vmem>>, vector<1x8x2xf32>
    %54 = vector.shape_cast %53 : vector<1x8x2xf32> to vector<8x2xf32>
    %55 = vector.shape_cast %52 : vector<8x2xf32> to vector<1x8x2xf32>
    tpu.vector_store %arg5[%c0_19, %c0_20, %c0_21], %55 {strides = array<i32>} : memref<1x8x2xf32, #tpu.memory_space<vmem>>, vector<1x8x2xf32>,
    return
  }
  func.func @transform_0(%arg0: i32) -> (i32, i32, i32, i32) {
    %c0_i32 = arith.constant 0 : i32
    %c0_i32_0 = arith.constant 0 : i32
    %c0_i32_1 = arith.constant 0 : i32
    %c0_i32_2 = arith.constant 0 : i32
    return %arg0, %c0_i32, %c0_i32_0, %c0_i32_1 : i32, i32, i32, i32
  }
  func.func @transform_1(%arg0: i32) -> (i32, i32, i32, i32) {
    %c0_i32 = arith.constant 0 : i32
    %c0_i32_0 = arith.constant 0 : i32
    %c0_i32_1 = arith.constant 0 : i32
    %c0_i32_2 = arith.constant 0 : i32
    return %arg0, %c0_i32, %c0_i32_0, %c0_i32_1 : i32, i32, i32, i32
  }
  func.func @transform_2(%arg0: i32) -> (i32, i32) {
    %c0_i32 = arith.constant 0 : i32
    %c0_i32_0 = arith.constant 0 : i32
    %c0_i32_1 = arith.constant 0 : i32
    return %c0_i32, %c0_i32_0 : i32, i32
  }
  func.func @transform_3(%arg0: i32) -> (i32, i32, i32) {
    %c0_i32 = arith.constant 0 : i32
    %c0_i32_0 = arith.constant 0 : i32
    %c0_i32_1 = arith.constant 0 : i32
    return %arg0, %c0_i32, %c0_i32_0 : i32, i32, i32
  }
  func.func @transform_4(%arg0: i32) -> (i32, i32, i32) {
    %c0_i32 = arith.constant 0 : i32
    %c0_i32_0 = arith.constant 0 : i32
    %c0_i32_1 = arith.constant 0 : i32
    return %arg0, %c0_i32, %c0_i32_0 : i32, i32, i32
  }
}

</mosaic_0001>

<bundles_post_ra>
// kernel: tpu_custom_call.1
= control target key start
LH: loop header
LB: loop body
LE: loop exit
PB: predicated region body
PF: predicated region fallthrough
CT: control target
= control target key end

     0   :  { %s1861_s0 = inlined_call_operand.hbm [shape: f32[2,4,16,16], index: 0, kind: input, shape index: {}]   ;;  %s1862_s1 = inlined_call_operand.hbm [shape: f32[2,4,16,16], index: 1, kind: input, shape index: {}]   ;;  %s1863_s2 = inlined_call_operand.hbm [shape: f32[8,36], index: 2, kind: input, shape index: {}]   ;;  %s1864_s3 = inlined_call_operand.hbm [shape: f32[2,8,256], index: 3, kind: output, shape index: {0}]   ;;  %s1865_s4 = inlined_call_operand.vmem [shape: f32[2,8,2], index: 4, kind: output, shape index: {1}]  }
   0x1   :  { %1871 = sst [smem:[#allocation13_spill]] %s1861_s0 }
   0x2   :  { %10 = vsyncpa [#allocation3], 0 }
   0x3   :  { %12 = vsyncpa [#allocation3 + $0x1], 0 }
   0x4   :  { %13 = vsyncpa [#allocation6], 0 }
   0x5   :  { %15 = vsyncpa [#allocation6 + $0x1], 0 }
   0x6   :  { %16 = vsyncpa [#allocation4], 0 }
   0x7   :  { %18 = vsyncpa [#allocation4 + $0x1], 0  ;;  %s1482_s15 = smov 0   ;;  %s1484_s16 = smov 0  }
   0x8   :  { %s1486_s17 = smov 0   ;;  %s1488_s18 = smov 0  }
   0x9 LB: > { %s1503_s19 = sadd.s32 4294967295, %s1413_s18   ;;  %s1054_s20 = sadd.s32 4294967294, %s1413_s18   ;;  %s1413_s18 = sphi %s1488_s18, %s1892_s18   ;;  %s1409_s17 = sphi %s1486_s17, %s1891_s17   ;;  %s1405_s16 = sphi %s1484_s16, %s1890_s16   ;;  %s1401_s15 = sphi %s1482_s15, %s1889_s15  }
   0xa   : > { %s1507_s21 = sadd.s32 1, %s1413_s18   ;;  %s31_s22 = sadd.s32 1, %s1409_s17 }
   0xb   : > { %s28_s23 = ssub.s32 %s1413_s18, %s1507_s21  ;;  %p38_p0 = scmp.ne.s32.totalorder %s1409_s17, %s1405_s16 }
   0xc   : > { %p29_p1 = scmp.eq.s32.totalorder %s28_s23, 0  ;;  %p39_p2 = scmp.eq.s32.totalorder %s1413_s18, 0 }
   0xd   : > { %p44_p3 = scmp.ne.s32.totalorder %s1405_s16, %s1401_s15  ;;  %p1866_p4 = scmp.eq.s32.totalorder %s1503_s19, 0 }
   0xe   : > { %s1519_s24 = scalar_select %p29_p1, %s1409_s17, %s31_s22  }
   0xf   : > { %p1521_p5 = por %p39_p2, %p38_p0  ;;  %p1527_p6 = por %p1866_p4, %p44_p3 }
  0x10   : > { %p115_p7 = scmp.eq.s32.totalorder %s1503_s19, 1  ;;  %p121_p8 = scmp.eq.s32.totalorder %s1054_s20, 1 }
  0x11   : > { %s1873_s26 = scalar_select %p1527_p6, 1, 0 }
  0x12   : > { %p1055_p9 = scmp.ge.s32.totalorder %s1413_s18, 1  ;;  %p154_p10 = scmp.lt.s32.totalorder %s1413_s18, 3 }
  0x13   : > { %p1534_p11 = por %p115_p7, %p38_p0  ;;  %p1538_p12 = por %p121_p8, %p44_p3 }
  0x14   : > { %p1542_p13 = pnand %p1055_p9, %p154_p10  ;;  %s1415_s30 = smov [#allocation7]  }
  0x15   : > { %s1874_s27 = scalar_select %p1534_p11, 1, 0 }
  0x16   : > { %s1875_s28 = scalar_select %p1538_p12, 1, 0 }
  0x17   : > { %s1876_s29 = scalar_select %p1542_p13, 1, 0 }
  0x18   : > { %p1126_p2 = pneg %p1542_p13  ;;  %s167_s5 = sshll.u32 %s1415_s30, 4  ;;  %s168_s5 = int_to_ptr.vmem [resolvable:$true] %s167_s5 }
  0x19   : > { %p1142_p4 = scmp.lt.s32.totalorder %s1413_s18, 2  ;;  %p1877_p0 = scmp.eq.s32.totalorder %s1503_s19, 0 }
  0x1a   : > { %s178_s7 = sand.u32 1, %s1409_s17   ;;  %s1251_s12 = scalar_lea.hbm %s1863_s2, 128 }
  0x1b   : > { %p1552_p7 = pnand %p1126_p2, %p1877_p0  ;;  %p1559_p3 = pnand %p1142_p4, %p1521_p5 }
  0x1c   : > { %s1563_s9 = sshll.u32 %s178_s7, 6  ;;  %p1252_p8 = scmp.ne.s32.totalorder %s1863_s2, %s1251_s12 }
  0x1d   : > { %s1879_s8 = scalar_select %p1559_p3, 1, 0 }
  0x1e   : > { %p1253_p9 = pneg %p1552_p7  ;;  %p1258_p4 = scmp.lt.u32.totalorder %s1251_s12, %s1863_s2 }
  0x20   : > { %p1254_p10 = pnand %p1253_p9, %p1252_p8 }
  0x22   : > { %p1255_p2 = pneg %p1254_p10 }
  0x24   : > { %p1260_p5 = pnand %p1258_p4, %p1255_p2 }
  0x26   : > { %1263 = shalt.err (!%p1260_p5)
}
  0x27   : > { %s1264_s23 = scalar_lea.vmem %s168_s5, 128  ;;  %p1272_p11 = scmp.lt.s32.totalorder %s168_s5, %s168_s5 }
  0x28   : > { %p1265_p0 = scmp.ne.s32.totalorder %s168_s5, %s1264_s23  ;;  %p1273_p6 = scmp.lt.s32.totalorder %s1264_s23, %s1264_s23 }
  0x2a   : > { %p1267_p1 = pnand %p1265_p0, %p1253_p9  ;;  %p1274_p13 = por %p1273_p6, %p1272_p11 }
  0x2c   : > { %p1268_p12 = pneg %p1267_p1 }
  0x2e   : > { %p1275_p3 = pnand %p1274_p13, %p1268_p12 }
  0x30   : > { %1278 = shalt.err (!%p1275_p3)
}
  0x31   : > { %1129 = dma.hbm_to_vmem [thread:$0]  (!%p1552_p7), %s1863_s2, 128, %s168_s5, [#allocation6]  }
  0x32   : > { %s1080_s10 = sshll.u32 %s1413_s18, 10  ;;  %s182_s11 = scalar_lea.vmem [#allocation2], %s1563_s9 }
  0x33   : > { %s189_s12 = sshll.u32 %s182_s11, 4  ;;  %s1880_s0 = sld [smem:[#allocation13_spill]]  ;;  %s1590_s12 = int_to_ptr.vmem [resolvable:$true] %s189_s12 }
  0x34   : > { %s1592_s6 = scalar_lea.sflag [#allocation3], %s178_s7  ;;  %p1881_p11 = scmp.ne.s32.totalorder %s1879_s8, 0 }
  0x36   : > { %p1281_p12 = pneg %p1881_p11 }
  0x39   : > { %s1588_s20 = scalar_lea.hbm %s1880_s0, %s1080_s10  ;;  %s1284_s25 = scalar_lea.hbm %s1880_s0, 2048 }
  0x3a   : > { %s1279_s22 = scalar_lea.hbm %s1588_s20, 1024  ;;  %p1285_p7 = scmp.lt.u32.totalorder %s1588_s20, %s1880_s0 }
  0x3b   : > { %p1280_p6 = scmp.ne.s32.totalorder %s1588_s20, %s1279_s22  ;;  %p1286_p3 = scmp.lt.u32.totalorder %s1284_s25, %s1279_s22 }
  0x3c   : > { %p1288_p9 = scmp.lt.u32.totalorder %s1279_s22, %s1588_s20 }
  0x3d   : > { %p1282_p13 = pnand %p1281_p12, %p1280_p6  ;;  %p1287_p8 = por %p1286_p3, %p1285_p7 }
  0x3f   : > { %p1283_p1 = pneg %p1282_p13  ;;  %p1289_p10 = por %p1288_p9, %p1287_p8 }
  0x41   : > { %p1290_p2 = pnand %p1289_p10, %p1283_p1 }
  0x43   : > { %1293 = shalt.err (!%p1290_p2)
}
  0x44   : > { %s1294_s7 = scalar_lea.vmem %s1590_s12, 1024  ;;  %s1416_s13 = smov [#allocation2]  }
  0x45   : > { %p1295_p4 = scmp.ne.s32.totalorder %s1590_s12, %s1294_s7  ;;  %s1299_s14 = sshll.u32 %s1416_s13, 4  ;;  %s1300_s14 = int_to_ptr.vmem [resolvable:$false] %s1299_s14 }
  0x46   : > { %s1301_s5 = scalar_lea.vmem %s1300_s14, 2048  ;;  %p1302_p6 = scmp.lt.s32.totalorder %s1590_s12, %s1300_s14 }
  0x47   : > { %p1297_p5 = pnand %p1295_p4, %p1281_p12  ;;  %p1303_p13 = scmp.lt.s32.totalorder %s1301_s5, %s1294_s7 }
  0x49   : > { %p1298_p0 = pneg %p1297_p5  ;;  %p1304_p7 = por %p1303_p13, %p1302_p6 }
  0x4b   : > { %p1305_p3 = pnand %p1304_p7, %p1298_p0 }
  0x4d   : > { %1308 = shalt.err (!%p1305_p3)
}
  0x4e   : > { %s1417_s22 = smov 128   ;;  %s1418_s23 = smov 8  }
  0x4f   : > { %1133 = dma.hbm_to_vmem [thread:$0]  (!%p1881_p11), %s1588_s20, 1024, %s1590_s12, %s1592_s6, %s1417_s22, %s1417_s22, %s1418_s23  }
  0x50   : > { %s1628_s11 = scalar_lea.hbm %s1862_s1, %s1080_s10  ;;  %s203_s7 = scalar_lea.vmem [#allocation5], %s1563_s9 }
  0x51   : > { %s210_s13 = sshll.u32 %s203_s7, 4  ;;  %s199_s14 = sand.u32 1, %s1413_s18   ;;  %s1632_s13 = int_to_ptr.vmem [resolvable:$true] %s210_s13 }
  0x52   : > { %s1634_s5 = scalar_lea.sflag [#allocation6], %s199_s14  ;;  %s1309_s0 = scalar_lea.hbm %s1628_s11, 1024 }
  0x53   : > { %p1310_p1 = scmp.ne.s32.totalorder %s1628_s11, %s1309_s0  ;;  %s1314_s20 = scalar_lea.hbm %s1862_s1, 2048 }
  0x54   : > { %p1315_p10 = scmp.lt.u32.totalorder %s1628_s11, %s1862_s1  ;;  %p1316_p2 = scmp.lt.u32.totalorder %s1314_s20, %s1309_s0 }
  0x55   : > { %p1312_p8 = pnand %p1310_p1, %p1281_p12  ;;  %p1318_p5 = scmp.lt.u32.totalorder %s1309_s0, %s1628_s11 }
  0x56   : > { %p1317_p4 = por %p1316_p2, %p1315_p10 }
  0x57   : > { %p1313_p9 = pneg %p1312_p8 }
  0x58   : > { %p1319_p0 = por %p1318_p5, %p1317_p4 }
  0x5a   : > { %p1320_p6 = pnand %p1319_p0, %p1313_p9 }
  0x5c   : > { %1323 = shalt.err (!%p1320_p6)
}
  0x5d   : > { %s1324_s9 = scalar_lea.vmem %s1632_s13, 1024  ;;  %s1419_s30 = smov [#allocation5]  }
  0x5e   : > { %p1325_p13 = scmp.ne.s32.totalorder %s1632_s13, %s1324_s9  ;;  %s1329_s7 = sshll.u32 %s1419_s30, 4  ;;  %s1330_s7 = int_to_ptr.vmem [resolvable:$false] %s1329_s7 }
  0x5f   : > { %s1331_s14 = scalar_lea.vmem %s1330_s7, 2048  ;;  %p1332_p1 = scmp.lt.s32.totalorder %s1632_s13, %s1330_s7 }
  0x60   : > { %p1327_p7 = pnand %p1325_p13, %p1281_p12  ;;  %p1333_p8 = scmp.lt.s32.totalorder %s1331_s14, %s1324_s9 }
  0x62   : > { %p1328_p3 = pneg %p1327_p7  ;;  %p1334_p10 = por %p1333_p8, %p1332_p1 }
  0x64   : > { %p1335_p2 = pnand %p1334_p10, %p1328_p3 }
  0x66   : > { %1338 = shalt.err (!%p1335_p2)
}
  0x67   : > { %1136 = dma.hbm_to_vmem [thread:$0]  (!%p1881_p11), %s1628_s11, 1024, %s1632_s13, %s1634_s5, %s1417_s22, %s1417_s22, %s1418_s23  }
  0x68   : > { %p1882_p12 = scmp.ne.s32.totalorder %s1876_s29, 0 }
  0x69   : > { %s1666_s0 = sand.u32 (!%p1882_p12), 1, %s1405_s16   ;;  %p1883_p9 = scmp.ne.s32.totalorder (!%p1882_p12), %s1873_s26, 0 }
  0x6a   : > { %222 = sbr.rel (%p1882_p12) target bundleno = 1053 (0x41d), region = 32  ;;  %s1065_s12 = sshll.u32 (!%p1882_p12), %s1666_s0, 6 }
  0x6b   : > { %s225_s10 = scalar_lea.sflag (!%p1882_p12), [#allocation3], %s1666_s0  ;;  %s1670_s20 = scalar_lea.vmem (!%p1882_p12), [#allocation2], %s1065_s12 }
  0x71   : > { %1384 = dma.done.wait (%p1883_p9), %s225_s10, 1024  }
  0x72   : > { %1386 = vsyncadd (%p1883_p9), %s225_s10, 4294966272  ;;  %s233_s8 = sand.u32 1, %s1503_s19   ;;  %s1677_s22 = scalar_lea.vmem [#allocation5], %s1065_s12 }
  0x73   : > { %s234_s29 = scalar_lea.sflag [#allocation6], %s233_s8 }
  0x74   : > { %1388 = dma.done.wait (%p1883_p9), %s234_s29, 1024  }
  0x75   : > { %1390 = vsyncadd (%p1883_p9), %s234_s29, 4294966272  ;;  %p1884_p11 = scmp.eq.s32.totalorder %s1503_s19, 0 }
  0x77   : > { %1392 = dma.done.wait (%p1884_p11), [#allocation6], 128   ;;  %p1885_p4 = pmov %p1884_p11 }
  0x78   : > { %v1420_v0 = vmov 0.0   ;;  %v1421_v1 = vmov 1983009808   ;;  %v317_v3 = vlaneseq  ;;  %v1422_v4 = vmov 1934713408   ;;  %v280_v6 = vld [vmem:[%s1670_s20 + $0x8] sm:$0xff] }
  0x79   : > { %1394 = vsyncadd (%p1885_p4), [#allocation6], 4294967168  ;;  %737 = vmatprep.mubr.f32.mxu0 %v1420_v0  ;;  %v315_v2 = vunpack.c.l.s4 %v1421_v1  ;;  %v347_v5 = vunpack.c.l.s4 %v1422_v4  ;;  %v282_v7 = vld [vmem:[%s1670_s20 + $0x18] sm:$0xff]  ;;  %v284_v8 = vld [vmem:[%s1670_s20 + $0x28] sm:$0xff]  ;;  %vm303_vm0 = vcmask 130048   ;;  %s1423_s26 = smov 52  }
  0x7a   : > { %v318_v10 = vshrl.u32 %v317_v3, 7  ;;  %v286_v12 = vld [vmem:[%s1670_s20 + $0x38] sm:$0xff]  ;;  %v288_v13 = vld [vmem:[%s1677_s22 + $0x8] sm:$0xff]  ;;  %v279_v19 = vld [vmem:[%s1670_s20] sm:$0xff]  ;;  %s1424_s23 = smov 16   ;;  %s1425_s11 = smov 88  }
  0x7b   : > { %v316_v9 = vunpack.c.0.s8 %v315_v2  ;;  %v348_v11 = vunpack.c.0.s8 %v347_v5  ;;  %v290_v14 = vld [vmem:[%s1677_s22 + $0x18] sm:$0xff]  ;;  %v292_v15 = vld [vmem:[%s1677_s22 + $0x28] sm:$0xff]  ;;  %v296_v17 = vadd.f32 %v288_v13, %v280_v6  ;;  %v281_v22 = vld [vmem:[%s1670_s20 + $0x10] sm:$0xff]  ;;  %s1426_s13 = smov 36   ;;  %s1427_s5 = smov 18   ;;  %vm523_vm1 = vcmask 277504  }
  0x7c   : > { %v294_v16 = vld [vmem:[%s1677_s22 + $0x38] sm:$0xff]  ;;  %v298_v18 = vadd.f32 %v290_v14, %v282_v7  ;;  %v300_v20 = vadd.f32 %v292_v15, %v284_v8  ;;  %v283_v23 = vld [vmem:[%s1670_s20 + $0x20] sm:$0xff]  ;;  %v285_v24 = vld [vmem:[%s1670_s20 + $0x30] sm:$0xff]  ;;  %s1428_s6 = smov 72   ;;  %s1429_s25 = smov 34   ;;  %vm508_vm2 = vcmask 146432  }
  0x7d   : > { %v302_v21 = vadd.f32 %v294_v16, %v286_v12  ;;  %v305_v25 = vsel %vm303_vm0, %v296_v17, 0.0  ;;  %v319_v27 = vsub.s32 %v316_v9, %v318_v10  ;;  %v1702_v28 = vsub.s32 %v348_v11, %v318_v10  ;;  %v287_v29 = vld [vmem:[%s1677_s22] sm:$0xff]  ;;  %v289_v30 = vld [vmem:[%s1677_s22 + $0x10] sm:$0xff]  ;;  %s1430_s9 = smov 126   ;;  %s1431_s30 = smov 70  }
  0x7e   : > { %v307_v26 = vsel %vm303_vm0, %v298_v18, 0.0  ;;  %v291_v31 = vld [vmem:[%s1677_s22 + $0x20] sm:$0xff]  ;;  %v309_v32 = vsel %vm303_vm0, %v300_v20, 0.0  ;;  %v293_v34 = vld [vmem:[%s1677_s22 + $0x30] sm:$0xff]  ;;  %v295_v35 = vadd.f32 %v287_v29, %v279_v19  ;;  %v297_v36 = vadd.f32 %v289_v30, %v281_v22  ;;  %s1432_s7 = smov 54   ;;  %s1433_s14 = smov 106  }
  0x7f   : > { %v311_v33 = vsel %vm303_vm0, %v302_v21, 0.0  ;;  %v380_v37 = vcombine.low %v305_v25, %v309_v32  ;;  %v381_v38 = vcombine.high %v305_v25, %v309_v32  ;;  %v299_v41 = vadd.f32 %v291_v31, %v283_v23  ;;  %s1434_s12 = smov 90   ;;  %s1435_s10 = smov 124  }
  0x80   : > { %v396_v39 = vcombine.low %v307_v26, %v311_v33  ;;  %v397_v40 = vcombine.high %v307_v26, %v311_v33  ;;  %v301_v42 = vadd.f32 %v293_v34, %v285_v24  ;;  %v304_v43 = vsel %vm303_vm0, %v295_v35, 0.0  ;;  %s1436_s20 = smov 108   ;;  %s1437_s8 = smov 14  }
  0x81   : > { %v306_v44 = vsel %vm303_vm0, %v297_v36, 0.0  ;;  %v388_v45 = vrot.slane %v380_v37, %v319_v27  ;;  %v395_v47 = vrot.slane %v381_v38, %v319_v27  ;;  %v308_v49 = vsel %vm303_vm0, %v299_v41, 0.0  ;;  %s1438_s29 = smov 19   ;;  %s1439_s22 = smov 109  }
  0x82   : > { %v404_v46 = vrot.slane %v396_v39, %v319_v27  ;;  %v411_v48 = vrot.slane %v397_v40, %v319_v27  ;;  %v310_v50 = vsel %vm303_vm0, %v301_v42, 0.0  ;;  %v312_v54 = vcombine.low %v304_v43, %v308_v49  ;;  %p1886_p0 = scmp.ne.s32.totalorder %s1874_s27, 0 }
  0x83   : > { %v328_v55 = vcombine.low %v306_v44, %v310_v50  ;;  %v313_v56 = vcombine.high %v304_v43, %v308_v49  ;;  %v329_v57 = vcombine.high %v306_v44, %v310_v50  ;;  %vm525_vm3 = vcmask 424960  }
  0x84   : > { %v413_v51 = vcombine.high %v388_v45, %v404_v46  ;;  %v412_v52 = vcombine.low %v388_v45, %v404_v46  ;;  %v428_v53 = vcombine.low %v395_v47, %v411_v48  ;;  %v320_v60 = vrot.slane %v312_v54, %v319_v27 }
  0x85   : > { %v336_v61 = vrot.slane %v328_v55, %v319_v27  ;;  %v327_v62 = vrot.slane %v313_v56, %v319_v27  ;;  %v343_v63 = vrot.slane %v329_v57, %v319_v27  ;;  %v429_v16 = vcombine.high %v395_v47, %v411_v48 }
  0x86   : > { %v427_v58 = vrot.slane %v413_v51, %v1702_v28  ;;  %v420_v59 = vrot.slane %v412_v52, %v1702_v28  ;;  %v436_v1 = vrot.slane %v428_v53, %v1702_v28  ;;  %vm510_vm4 = vcmask 293888  }
  0x87   : > { %v345_v2 = vcombine.high %v320_v60, %v336_v61  ;;  %v360_v3 = vcombine.low %v327_v62, %v343_v63  ;;  %v344_v4 = vcombine.low %v320_v60, %v336_v61  ;;  %v361_v5 = vcombine.high %v327_v62, %v343_v63 }
  0x88   : > { %485 = vrot.lane.b32.xlu1 %v427_v58, %s1423_s26  ;;  %477 = vrot.lane.b32.xlu0 %v420_v59, %s1424_s23  ;;  %v444_v11 = vcombine.high %v420_v59, %v1420_v0  ;;  %v445_v13 = vcombine.high %v427_v58, %v1420_v0  ;;  %v446_v15 = vcombine.high %v436_v1, %v1420_v0  ;;  %vm527_vm5 = vcmask 572416   ;;  %s1440_s26 = smov 127   ;;  %s1441_s23 = smov 110  }
  0x89   : > { %v359_v6 = vrot.slane %v345_v2, %v1702_v28  ;;  %v352_v7 = vrot.slane %v344_v4, %v1702_v28  ;;  %v368_v8 = vrot.slane %v360_v3, %v1702_v28  ;;  %v375_v10 = vrot.slane %v361_v5, %v1702_v28 }
  0x8a   : > { %v443_v18 = vrot.slane %v429_v16, %v1702_v28  ;;  %vm512_vm6 = vcmask 441344   ;;  %vm529_vm7 = vcmask 719872   ;;  %vm514_vm8 = vcmask 588800  }
  0x8b   : > { %v376_v9 = vcombine.high %v352_v7, %v1420_v0  ;;  %v379_v12 = vcombine.high %v375_v10, %v1420_v0  ;;  %v377_v14 = vcombine.high %v359_v6, %v1420_v0  ;;  %v378_v17 = vcombine.high %v368_v8, %v1420_v0 }
  0x8c   : > { %493 = vrot.lane.b32.xlu1 %v436_v1, %s1425_s11  ;;  %453 = vrot.lane.b32.xlu0 %v359_v6, %s1426_s13  ;;  %v447_v19 = vcombine.high %v443_v18, %v1420_v0  ;;  %vm531_vm9 = vcmask 867328   ;;  %vm516_vm10 = vcmask 736256   ;;  %vm533_vm11 = vcmask 1014784   ;;  %s1442_s11 = smov 92   ;;  %s1445_s13 = smov 91  }
  0x8d   : > { %vm518_vm12 = vcmask 883712   ;;  %vm520_vm13 = vcmask 1031168   ;;  %vm535_vm14 = vcmask 113664   ;;  %vm546_vm15 = vcmask 154624  }
  0x8e   : > { %v1443_v61 = vmov 0.0|0.0  }
  0x8f   : > { %1110 = vmatprep.subr.bf16.mxu1 %v1443_v61 }
  0x90   : > { %449 = vrot.lane.b32.xlu1 %v376_v9, %s1427_s5  ;;  %461 = vrot.lane.b32.xlu0 %v368_v8, %s1428_s6  ;;  %s1446_s5 = smov 100   ;;  %s1447_s6 = smov 122  }
  0x94   : > { %481 = vrot.lane.b32.xlu1 %v444_v11, %s1429_s25  ;;  %473 = vrot.lane.b32.xlu0 %v379_v12, %s1430_s9  ;;  %s1448_s25 = smov 114  }
  0x98   : > { %489 = vrot.lane.b32.xlu1 %v445_v13, %s1431_s30  ;;  %457 = vrot.lane.b32.xlu0 %v377_v14, %s1432_s7  ;;  %s1449_s30 = smov 120   ;;  %s1450_s7 = smov 118  }
  0x9c   : > { %497 = vrot.lane.b32.xlu1 %v446_v15, %s1433_s14  ;;  %465 = vrot.lane.b32.xlu0 %v378_v17, %s1434_s12 }
  0xa0   : > { %501 = vrot.lane.b32.xlu1 %v443_v18, %s1435_s10  ;;  %469 = vrot.lane.b32.xlu0 %v375_v10, %s1436_s20 }
  0xa4   : > { %505 = vrot.lane.b32.xlu0 %v447_v19, %s1437_s8  ;;  %s1453_s8 = smov 104  }
  0xfa   : > { %v486_v20 = vpop.permute.xlu1 %485  ;;  %v478_v21 = vpop.permute.xlu0 %477 }
  0xfe   : > { %v494_v22 = vpop.permute.xlu1 %493  ;;  %v454_v23 = vpop.permute.xlu0 %453 }
 0x102   : > { %v450_v24 = vpop.permute.xlu1 %449  ;;  %v462_v25 = vpop.permute.xlu0 %461 }
 0x103   : > { %v509_v31 = vsel %vm508_vm2, %v352_v7, %v450_v24  ;;  %vm1444_vm2 = vmmov 0  }
 0x104   : > { %v511_v34 = vsel %vm510_vm4, %v509_v31, %v454_v23  ;;  %1099 = vmatprep.mubr.msk.f32.mxu1 %vm1444_vm2, %v1420_v0 }
 0x106   : > { %v482_v26 = vpop.permute.xlu1 %481  ;;  %v474_v27 = vpop.permute.xlu0 %473 }
 0x107   : > { %v522_v28 = vsel %vm303_vm0, %v474_v27, %v478_v21 }
 0x108   : > { %v524_v29 = vsel %vm523_vm1, %v522_v28, %v482_v26  ;;  %vm553_vm1 = vcmask 416768  }
 0x109   : > { %v526_v33 = vsel %vm525_vm3, %v524_v29, %v486_v20  ;;  %vm566_vm3 = vcmask 1039360  }
 0x10a   : > { %v490_v30 = vpop.permute.xlu1 %489  ;;  %v458_v32 = vpop.permute.xlu0 %457 }
 0x10b   : > { %v528_v35 = vsel %vm527_vm5, %v526_v33, %v490_v30  ;;  %v513_v37 = vsel %vm512_vm6, %v511_v34, %v458_v32  ;;  %vm601_vm5 = vcmask 891904   ;;  %vm624_vm6 = vcmask 752640  }
 0x10c   : > { %v530_v39 = vsel %vm529_vm7, %v528_v35, %v494_v22  ;;  %v515_v40 = vsel %vm514_vm8, %v513_v37, %v462_v25  ;;  %vm650_vm7 = vcmask 1043456   ;;  %vm636_vm8 = vcmask 744448  }
 0x10e   : > { %v498_v36 = vpop.permute.xlu1 %497  ;;  %v466_v38 = vpop.permute.xlu0 %465 }
 0x10f   : > { %v532_v41 = vsel %vm531_vm9, %v530_v39, %v498_v36  ;;  %v517_v43 = vsel %vm516_vm10, %v515_v40, %v466_v38  ;;  %vm589_vm9 = vcmask 900096  }
 0x112   : > { %v502_v42 = vpop.permute.xlu1 %501  ;;  %v470_v44 = vpop.permute.xlu0 %469 }
 0x113   : > { %v534_v45 = vsel %vm533_vm11, %v532_v41, %v502_v42  ;;  %v519_v46 = vsel %vm518_vm12, %v517_v43, %v470_v44  ;;  %vm875_vm11 = vcmask 523264  }
 0x114   : > { %542 = vrot.lane.b32.xlu1 %v534_v45, %s1438_s29  ;;  %v521_v48 = vsel %vm520_vm13, %v519_v46, %v474_v27 }
 0x116   : > { %v506_v47 = vpop.permute.xlu0 %505 }
 0x117   : > { %v536_v49 = vsel %vm535_vm14, %v502_v42, %v506_v47  ;;  %vm879_vm14 = vcmask 785408  }
 0x118   : > { %540 = vrot.lane.b32.xlu1 %v521_v48, %s1438_s29  ;;  %544 = vrot.lane.b32.xlu0 %v536_v49, %s1438_s29  ;;  %s1455_s29 = smov 98  }
 0x186   : > { %v543_v50 = vpop.permute.xlu1 %542 }
 0x18a   : > { %v541_v51 = vpop.permute.xlu1 %540  ;;  %v545_v52 = vpop.permute.xlu0 %544 }
 0x18b   : > { %v1740_v53 = vsel %vm546_vm15, %v541_v51, %v543_v50  ;;  %v1742_v54 = vsel %vm546_vm15, 0.0, %v541_v51  ;;  %v548_v55 = vsel %vm546_vm15, %v543_v50, %v545_v52  ;;  %vm838_vm15 = vcmask 932864  }
 0x18c   : > { %572 = vrot.lane.b32.xlu0 %v1742_v54, %s1430_s9  ;;  %v1746_v56 = vsel %vm553_vm1, %v548_v55, 0.0  ;;  %v557_v58 = vrot.slane %v1742_v54, 4  ;;  %v558_v60 = vrot.slane %v1740_v53, 4  ;;  %vm881_vm1 = vcmask 916480  }
 0x18d   : > { %v1216_v57 = vpack.i.bf16 %v1746_v56, %v1740_v53  ;;  %v559_v59 = vrot.slane %v1746_v56, 4 }
 0x18f   : > { %1217 = vrot.lane.b32.xlu1 %v1216_v57, %s1430_s9  ;;  %v1231_v62 = vpack.i.bf16 %v559_v59, %v558_v60 }
 0x190   : > { %595 = vrot.lane.b32.xlu0 %v1742_v54, %s1439_s22 }
 0x193   : > { %560 = vrot.lane.b32.xlu1 %v557_v58, %s1440_s26 }
 0x194   : > { %1222 = vrot.lane.b32.xlu0 %v1216_v57, %s1439_s22 }
 0x197   : > { %583 = vrot.lane.b32.xlu1 %v557_v58, %s1441_s23 }
 0x198   : > { %1227 = vrot.lane.b32.xlu0 %v1216_v57, %s1442_s11 }
 0x19b   : > { %607 = vrot.lane.b32.xlu1 %v557_v58, %s1436_s20 }
 0x19c   : > { %1232 = vrot.lane.b32.xlu0 %v1231_v62, %s1440_s26  ;;  %s1082_s26 = sshll.u32 %s1503_s19, 8 }
 0x19f   : > { %1242 = vrot.lane.b32.xlu1 %v1231_v62, %s1436_s20 }
 0x1a0   : > { %1237 = vrot.lane.b32.xlu0 %v1231_v62, %s1441_s23 }
 0x1a3   : > { %1247 = vrot.lane.b32.xlu1 %v1231_v62, %s1445_s13  ;;  %v663_v62 = vld [vmem:[#allocation7] sm:$0xff] }
 0x1a4   : > { %618 = vrot.lane.b32.xlu0 %v1742_v54, %s1442_s11 }
 0x1a7   : > { %630 = vrot.lane.b32.xlu1 %v557_v58, %s1445_s13  ;;  %s1818_s13 = scalar_lea.hbm %s1864_s3, %s1082_s26 }
 0x1a8   : > { %644 = vrot.lane.b32.xlu0 %v1740_v53, %s1434_s12 }
 0x1ab   : > { %646 = vrot.lane.b32.xlu1 %v1746_v56, %s1434_s12 }
 0x1ac   : > { %642 = vrot.lane.b32.xlu0 %v1742_v54, %s1434_s12  ;;  %s1451_s12 = smov 116  }
 0x1fe   : > { %v573_v63 = vpop.permute.xlu0 %572 }
 0x201   : > { %v1218_v1 = vpop.permute.xlu1 %1217 }
 0x202   : > { %v596_v2 = vpop.permute.xlu0 %595  ;;  %v1220_v9 = vunpack.i.h.bf16 %v1218_v1  ;;  %v1219_v10 = vunpack.i.l.bf16 %v1218_v1 }
 0x204   : > { %v579_v26 = vsel %vm520_vm13, %v1219_v10, %v1220_v9  ;;  %v578_v27 = vsel %vm520_vm13, %v573_v63, %v1219_v10  ;;  %vm864_vm13 = vcmask 818176  }
 0x205   : > { %v561_v3 = vpop.permute.xlu1 %560 }
 0x206   : > { %v1223_v4 = vpop.permute.xlu0 %1222 }
 0x207   : > { %v1225_v13 = vunpack.i.h.bf16 %v1223_v4  ;;  %v1224_v14 = vunpack.i.l.bf16 %v1223_v4 }
 0x209   : > { %v584_v5 = vpop.permute.xlu1 %583  ;;  %v603_v24 = vsel %vm601_vm5, %v1224_v14, %v1225_v13 }
 0x20a   : > { %v1228_v6 = vpop.permute.xlu0 %1227 }
 0x20b   : > { %v1230_v15 = vunpack.i.h.bf16 %v1228_v6  ;;  %v1229_v16 = vunpack.i.l.bf16 %v1228_v6 }
 0x20d   : > { %v608_v7 = vpop.permute.xlu1 %607  ;;  %v626_v25 = vsel %vm624_vm6, %v1229_v16, %v1230_v15 }
 0x20e   : > { %v1233_v8 = vpop.permute.xlu0 %1232 }
 0x20f   : > { %v1235_v11 = vunpack.i.h.bf16 %v1233_v8  ;;  %v1234_v12 = vunpack.i.l.bf16 %v1233_v8 }
 0x211   : > { %v1243_v17 = vpop.permute.xlu1 %1242  ;;  %v568_v19 = vsel %vm566_vm3, %v1234_v12, %v1235_v11  ;;  %v653_v28 = vsel %vm650_vm7, %v1746_v56, %v1235_v11  ;;  %v567_v31 = vsel %vm566_vm3, %v561_v3, %v1234_v12 }
 0x212   : > { %v1238_v18 = vpop.permute.xlu0 %1237  ;;  %v1245_v20 = vunpack.i.h.bf16 %v1243_v17  ;;  %v1244_v21 = vunpack.i.l.bf16 %v1243_v17  ;;  %v652_v35 = vsel %vm650_vm7, %v1740_v53, %v568_v19  ;;  %v651_v43 = vsel %vm650_vm7, %v1742_v54, %v567_v31 }
 0x213   : > { %v1240_v22 = vunpack.i.h.bf16 %v1238_v18  ;;  %v1239_v23 = vunpack.i.l.bf16 %v1238_v18  ;;  %v602_v54 = vsel %vm601_vm5, %v596_v2, %v1224_v14 }
 0x214   : > { %v614_v38 = vsel %vm518_vm12, %v1244_v21, %v1245_v20  ;;  %v613_v42 = vsel %vm518_vm12, %v608_v7, %v1244_v21  ;;  %v659_v45 = vsel %vm650_vm7, %v1225_v13, %v1245_v20  ;;  %vm877_vm12 = vcmask 654336  }
 0x215   : > { %v656_v29 = vsel %vm650_vm7, %v1220_v9, %v1240_v22  ;;  %v591_v30 = vsel %vm589_vm9, %v1239_v23, %v1240_v22  ;;  %v1248_v32 = vpop.permute.xlu1 %1247  ;;  %v590_v37 = vsel %vm589_vm9, %v584_v5, %v1239_v23  ;;  %v658_v51 = vsel %vm650_vm7, %v603_v24, %v614_v38 }
 0x216   : > { %v619_v33 = vpop.permute.xlu0 %618  ;;  %v1111_v34 = vpack.c.bf16 %v656_v29, %v653_v28  ;;  %v655_v36 = vsel %vm650_vm7, %v579_v26, %v591_v30  ;;  %v1250_v39 = vunpack.i.h.bf16 %v1248_v32  ;;  %v1249_v40 = vunpack.i.l.bf16 %v1248_v32 }
 0x217   : > { %v1102_v41 = vpack.c.bf16 %v655_v36, %v652_v35  ;;  %v654_v44 = vsel %vm650_vm7, %v578_v27, %v590_v37  ;;  %v625_v55 = vsel %vm624_vm6, %v619_v33, %v1229_v16  ;;  %v657_v59 = vsel %vm650_vm7, %v602_v54, %v613_v42 }
 0x218   : > { %1112 = vmatpush3.bf16.msra.mxu1 %v1111_v34  ;;  %v638_v46 = vsel %vm636_vm8, %v1249_v40, %v1250_v39  ;;  %v1104_v47 = vpack.c.bf16 %v654_v44, %v651_v43  ;;  %v662_v48 = vsel %vm650_vm7, %v1230_v15, %v1250_v39 }
 0x219   : > { %1103 = vmatprep.subr.bf16.mxu0 %v1102_v41  ;;  %1113 = vmatprep.subr.bf16.mxu1 %v1443_v61  ;;  %v631_v49 = vpop.permute.xlu1 %630  ;;  %v661_v52 = vsel %vm650_vm7, %v626_v25, %v638_v46  ;;  %v1114_v53 = vpack.c.bf16 %v662_v48, %v659_v45 }
 0x21a   : > { %v645_v50 = vpop.permute.xlu0 %644  ;;  %v637_v56 = vsel %vm636_vm8, %v631_v49, %v1249_v40  ;;  %1105 = vmatpush1.bf16.msra.mxu0 %v1104_v47  ;;  %v1106_v57 = vpack.c.bf16 %v661_v52, %v658_v51 }
 0x21b   : > { %v660_v58 = vsel %vm650_vm7, %v625_v55, %v637_v56 }
 0x21c   : > { %1115 = vmatpush3.bf16.msra.mxu1 %v1114_v53  ;;  %1107 = vmatprep.subr.bf16.mxu0 %v1106_v57  ;;  %v1108_v60 = vpack.c.bf16 %v660_v58, %v657_v59 }
 0x21d   : > { %1097 = vmatprep.subr.mxu1 %v1420_v0  ;;  %v647_v61 = vpop.permute.xlu1 %646 }
 0x21e   : > { %v649_v63 = vsel %vm516_vm10, %v645_v50, %v647_v61  ;;  %v643_v1 = vpop.permute.xlu0 %642  ;;  %1109 = vmatpush1.bf16.msra.mxu0 %v1108_v60 }
 0x21f   : > { %1070 = vmatprep.subr.msk.mxu0 %vm650_vm7, %v649_v63  ;;  %v648_v2 = vsel %vm516_vm10, %v643_v1, %v645_v50  ;;  %vm873_vm10 = vcmask 392192  }
 0x220   : > { %1098 = vmatpush3.msk.msra.mxu1 %vm650_vm7, %v647_v61 }
 0x221   : > { %1100 = vmatmul.mubr.msk.f32.vlgmr.msra.gmra.mrb[0].mxu1 %vm510_vm4, %v663_v62 }
 0x222   : > { %1071 = vmatpush1.msk.msra.mxu0 %vm650_vm7, %v648_v2 }
 0x223   : > { %1072 = vmatmul.mubr.msk.f32.vlgmr.msra.gmra.mrb[0].mxu0 %vm510_vm4, %v663_v62  ;;  %vm871_vm4 = vcmask 261120  }
 0x2f4   : > { %v810_v3 = vpop.f32.mrb[0].mxu1 }
 0x2f5   : > { %862 = vrot.lane.b32.xlu1 %v810_v3, %s1446_s5  ;;  %v1101_v0 = vpop.f32.mrb[1].mxu1 }
 0x2f6   : > { %v739_v4 = vpop.f32.mrb[0].mxu0 }
 0x2f7   : > { %818 = vrot.lane.b32.xlu0 %v739_v4, %s1435_s10  ;;  %v741_v5 = vpop.f32.mrb[1].mxu0  ;;  %s1452_s10 = smov 112  }
 0x2f9   : > { %815 = vrot.lane.b32.xlu1 %v739_v4, %s1430_s9  ;;  %s1454_s9 = smov 102  }
 0x2fb   : > { %821 = vrot.lane.b32.xlu0 %v739_v4, %s1447_s6 }
 0x2fd   : > { %834 = vrot.lane.b32.xlu1 %v739_v4, %s1448_s25 }
 0x2ff   : > { %824 = vrot.lane.b32.xlu0 %v739_v4, %s1449_s30 }
 0x301   : > { %844 = vrot.lane.b32.xlu1 %v741_v5, %s1441_s23 }
 0x303   : > { %827 = vrot.lane.b32.xlu0 %v739_v4, %s1450_s7 }
 0x305   : > { %847 = vrot.lane.b32.xlu1 %v741_v5, %s1436_s20 }
 0x307   : > { %830 = vrot.lane.b32.xlu0 %v739_v4, %s1451_s12 }
 0x309   : > { %850 = vrot.lane.b32.xlu1 %v741_v5, %s1433_s14  ;;  %s1068_s14 = sshll.u32 %s1666_s0, 4 }
 0x30a   : > { %s268_s20 = scalar_lea.vmem [#allocation8], %s1068_s14 }
 0x30b   : > { %841 = vrot.lane.b32.xlu0 %v741_v5, %s1452_s10  ;;  %s925_s22 = sshll.u32 %s268_s20, 4  ;;  %s926_s22 = int_to_ptr.vmem [resolvable:$true] %s925_s22 }
 0x30c   : > { %s1339_s6 = scalar_lea.vmem %s926_s22, 256 }
 0x30d   : > { %853 = vrot.lane.b32.xlu1 %v741_v5, %s1453_s8  ;;  %p1340_p5 = scmp.ne.s32.totalorder %s926_s22, %s1339_s6 }
 0x30f   : > { %860 = vrot.lane.b32.xlu0 %v741_v5, %s1446_s5  ;;  %s907_s5 = scalar_lea.sflag [#allocation4], %s1666_s0  ;;  %p1341_p6 = pnand %p1340_p5, %p1886_p0 }
 0x311   : > { %856 = vrot.lane.b32.xlu1 %v741_v5, %s1454_s9  ;;  %p1342_p13 = pneg %p1341_p6 }
 0x313   : > { %836 = vrot.lane.b32.xlu0 %v741_v5, %s1448_s25  ;;  %s1456_s25 = smov [#allocation8]  }
 0x314   : > { %s1343_s30 = sshll.u32 %s1456_s25, 4  ;;  %s1344_s30 = int_to_ptr.vmem [resolvable:$false] %s1343_s30 }
 0x315   : > { %867 = vrot.lane.b32.xlu1 %v810_v3, %s1455_s29  ;;  %s1345_s7 = scalar_lea.vmem %s1344_s30, 512  ;;  %p1346_p7 = scmp.lt.s32.totalorder %s926_s22, %s1344_s30 }
 0x316   : > { %p1347_p3 = scmp.lt.s32.totalorder %s1345_s7, %s1339_s6 }
 0x318   : > { %p1348_p1 = por %p1347_p3, %p1346_p7 }
 0x31a   : > { %p1349_p8 = pnand %p1348_p1, %p1342_p13 }
 0x367   : > { %v863_v6 = vpop.permute.xlu1 %862 }
 0x369   : > { %v819_v7 = vpop.permute.xlu0 %818 }
 0x36b   : > { %v816_v8 = vpop.permute.xlu1 %815 }
 0x36c   : > { %v870_v17 = vsel %vm303_vm0, %v739_v4, %v816_v8 }
 0x36d   : > { %v822_v9 = vpop.permute.xlu0 %821  ;;  %v872_v22 = vsel %vm871_vm4, %v870_v17, %v819_v7 }
 0x36e   : > { %v874_v27 = vsel %vm873_vm10, %v872_v22, %v822_v9 }
 0x36f   : > { %v835_v10 = vpop.permute.xlu1 %834 }
 0x371   : > { %v825_v11 = vpop.permute.xlu0 %824 }
 0x372   : > { %v876_v29 = vsel %vm875_vm11, %v874_v27, %v825_v11 }
 0x373   : > { %v845_v12 = vpop.permute.xlu1 %844 }
 0x375   : > { %v828_v13 = vpop.permute.xlu0 %827 }
 0x376   : > { %v878_v30 = vsel %vm877_vm12, %v876_v29, %v828_v13 }
 0x377   : > { %v848_v14 = vpop.permute.xlu1 %847 }
 0x379   : > { %v831_v15 = vpop.permute.xlu0 %830 }
 0x37a   : > { %v880_v33 = vsel %vm879_vm14, %v878_v30, %v831_v15 }
 0x37b   : > { %v851_v16 = vpop.permute.xlu1 %850 }
 0x37d   : > { %v842_v18 = vpop.permute.xlu0 %841 }
 0x37e   : > { %v883_v19 = vsel %vm303_vm0, %v842_v18, %v845_v12 }
 0x37f   : > { %v854_v20 = vpop.permute.xlu1 %853  ;;  %v884_v21 = vsel %vm871_vm4, %v883_v19, %v848_v14 }
 0x380   : > { %v885_v23 = vsel %vm873_vm10, %v884_v21, %v851_v16 }
 0x381   : > { %v861_v24 = vpop.permute.xlu0 %860  ;;  %v886_v25 = vsel %vm875_vm11, %v885_v23, %v854_v20 }
 0x382   : > { %v865_v31 = vsel %vm864_vm13, %v861_v24, %v863_v6 }
 0x383   : > { %v857_v26 = vpop.permute.xlu1 %856 }
 0x384   : > { %v887_v28 = vsel %vm877_vm12, %v886_v25, %v857_v26 }
 0x385   : > { %v837_v32 = vpop.permute.xlu0 %836  ;;  %v888_v36 = vsel %vm879_vm14, %v887_v28, %v865_v31 }
 0x386   : > { %v839_v34 = vsel %vm838_vm15, %v835_v10, %v837_v32 }
 0x387   : > { %v868_v35 = vpop.permute.xlu1 %867  ;;  %v882_v38 = vsel %vm881_vm1, %v880_v33, %v839_v34 }
 0x388   : > { %v889_v37 = vsel %vm881_vm1, %v888_v36, %v868_v35  ;;  %890 = vst [vmem:[%s268_s20] sm:$0xff] %v882_v38  ;;  %v896_v40 = vmul.f32 %v882_v38, %v882_v38 }
 0x389   : > { %891 = vst [vmem:[%s268_s20 + $0x8] sm:$0xff] %v889_v37  ;;  %v892_v39 = vadd.f32 %v889_v37, %v882_v38  ;;  %v897_v41 = vmul.f32 %v889_v37, %v889_v37 }
 0x38b   : > { %893 = vadd.xlane.f32.xlu0 %v892_v39  ;;  %v898_v42 = vadd.f32 %v897_v41, %v896_v40 }
 0x38d   : > { %899 = vadd.xlane.f32.xlu1 %v898_v42 }
 0x38e   : > { %1352 = shalt.err (!%p1349_p8)
}
 0x38f   : > { %s1353_s0 = scalar_lea.hbm %s1818_s13, 256  ;;  %s1357_s8 = scalar_lea.hbm %s1864_s3, 512 }
 0x390   : > { %p1354_p10 = scmp.ne.s32.totalorder %s1818_s13, %s1353_s0  ;;  %p1358_p9 = scmp.lt.u32.totalorder %s1818_s13, %s1864_s3 }
 0x391   : > { %p1359_p11 = scmp.lt.u32.totalorder %s1357_s8, %s1353_s0  ;;  %p1361_p5 = scmp.lt.u32.totalorder %s1353_s0, %s1818_s13 }
 0x392   : > { %p1355_p2 = pnand %p1354_p10, %p1886_p0 }
 0x393   : > { %p1360_p4 = por %p1359_p11, %p1358_p9 }
 0x394   : > { %p1356_p12 = pneg %p1355_p2 }
 0x395   : > { %p1362_p6 = por %p1361_p5, %p1360_p4 }
 0x397   : > { %p1363_p13 = pnand %p1362_p6, %p1356_p12 }
 0x399   : > { %1366 = shalt.err (!%p1363_p13)
}
 0x39a   : > { %1124 = dma.vmem_to_hbm [thread:$0]  (%p1886_p0), %s926_s22, 256, %s1818_s13, %s907_s5   ;;  %vm902_vm0 = vcmask 7168   ;;  %vm904_vm2 = vcmask 15360  }
 0x39b   : > { %p275_p7 = scmp.lt.s32.totalorder %s1503_s19, 1 }
 0x39d   : > { %s1894_s19 = smov (!%p275_p7, %s1503_s19), 1 }
 0x39e   : > { %s1069_s14 = sshll.u32 %s1894_s19, 3 }
 0x39f   : > { %s278_s23 = scalar_lea.vmem %s1865_s4, %s1069_s14 }
 0x418   : > { %v894_v43 = vpop.xlane.xlu0 %893 }
 0x41a   : > { %v900_v44 = vpop.xlane.xlu1 %899 }
 0x41b   : > { %v903_v45 = vsel %vm902_vm0, %v894_v43, %v900_v44 }
 0x41c   : > { %905 = vst.msk [vmem:[%s278_s23] sm:$0xff] %vm904_vm2, %v903_v45 }
 0x41d PF: > { %s940_s27 = sand.u32 1, %s1401_s15   ;;  %p1887_p3 = scmp.ne.s32.totalorder %s1875_s28, 0 }
 0x41e   : > { %p1888_p0 = scmp.ge.s32.totalorder %s1413_s18, 2  ;;  %s941_s22 = scalar_lea.sflag [#allocation4], %s940_s27 }
 0x420   : > { %p1138_p1 = pnand %p1888_p0, %p1887_p3 }
 0x422   : > { %1396 = dma.done.wait (!%p1138_p1), %s941_s22, 256  }
 0x423   : > { %1398 = vsyncadd (!%p1138_p1), %s941_s22, 4294967040  ;;  %p21_p8 = scmp.ge.s32.totalorder %s1507_s21, 4   ;;  %s1889_s15 = smov %s1405_s16 }
 0x424   : > { %s1890_s16 = smov %s1409_s17  ;;  %s1891_s17 = smov %s1519_s24 }
 0x425   : > { %s1892_s18 = smov %s1507_s21  ;;  %23 = sbr.rel (!%p21_p8) target bundleno = 9 (0x9), region = 106 }
 0x42c   :  { %953 = vsyncpa [#allocation3], 1 }
 0x42d   :  { %955 = vsyncpa [#allocation3 + $0x1], 1 }
 0x42e   :  { %956 = vsyncpa [#allocation6], 1 }
 0x42f   :  { %958 = vsyncpa [#allocation6 + $0x1], 1 }
 0x430   :  { %959 = vsyncpa [#allocation4], 1 }
 0x431   :  { %961 = vsyncpa [#allocation4 + $0x1], 1 }

</bundles_post_ra>
